<compile_context>
chip_gen: v7x
topology: tpu7x:2x2x1
jax: 0.10.0
libtpu: 0.0.40
codegen_flags: <defaults>
</compile_context>

<pallas_src>
import functools
import math

import jax
import jax.numpy as jnp
from jax.experimental import pallas as pl
from jax.experimental.pallas import tpu as pltpu


def _dice_partial_kernel(p_ref, t_ref, num_ref, den_ref, *,
                         d_valid, tile_d, tiles_per_chunk, mask_tail, p_pow):
    """Accumulates lane-wise partial sums of predict*target and
    predict^p + target^p into per-chunk (rows, 128) output blocks."""
    c = pl.program_id(0)          # parallel chunk of the feature axis
    k = pl.program_id(1)          # reduction step within the chunk

    @pl.when(k == 0)
    def _init():
        num_ref[...] = jnp.zeros_like(num_ref)
        den_ref[...] = jnp.zeros_like(den_ref)

    rows, lanes = p_ref.shape
    n_groups = lanes // 128       # tile_d is always a multiple of 128

    if mask_tail:
        # Global (folded) column index of lane 0 of this tile, per vreg lane.
        g = c * tiles_per_chunk + k
        base = g * tile_d + jax.lax.broadcasted_iota(jnp.int32, (rows, 128), 1)

    num_f = jnp.zeros((rows, 128), jnp.float32)
    den_f = jnp.zeros((rows, 128), jnp.float32)
    for j in range(n_groups):
        pj = p_ref[:, pl.ds(j * 128, 128)].astype(jnp.float32)
        tj = t_ref[:, pl.ds(j * 128, 128)].astype(jnp.float32)
        num_j = pj * tj
        if p_pow == 2:
            den_j = pj * pj + tj * tj
        else:                      # p_pow == 1 (validated in the wrapper)
            den_j = pj + tj
        if mask_tail:
            valid = (base + j * 128) < d_valid
            num_j = jnp.where(valid, num_j, 0.0)
            den_j = jnp.where(valid, den_j, 0.0)
        num_f = num_f + num_j
        den_f = den_f + den_j

    num_ref[...] += num_f[None]
    den_ref[...] += den_f[None]


def _pick_fold(n, d):
    """Fold factor r (must divide d): present data as (n*r, d//r) so the
    sublane dim of each (8,128) vreg is filled when the batch is small."""
    if n >= 8 or d <= 0:
        return 1
    for r in (8 // math.gcd(n, 8), 8, 4, 2):
        if r > 1 and d % r == 0:
            return r
    return 1


def binary_dice_loss(predict, target, *, smooth=1.0, p=2, reduction="mean"):
    if predict.shape[0] != target.shape[0]:
        raise ValueError("predict & target batch size don't match")
    if p not in (1, 2):
        # TODO(synk): general p via jnp.power; only p in {1, 2} is wired up.
        raise NotImplementedError(f"p={p} not supported (only p in {{1, 2}})")
    if reduction not in ("mean", "sum", "none"):
        raise ValueError(f"Unexpected reduction {reduction}")

    n = predict.shape[0]
    # torch .view(N, -1): collapsing trailing dims of a row-major array is a
    # free reshape (no HBM pass).  Inputs stay in their native dtype.
    pred2d = jnp.reshape(predict, (n, -1))
    targ2d = jnp.reshape(target, (n, -1))
    d = pred2d.shape[1]
    if targ2d.shape[1] != d:
        raise ValueError("predict & target per-sample sizes don't match")

    # Fold rows to fill sublanes when N < 8 (also a free reshape).
    r = _pick_fold(n, d)
    rows = n * r
    d_fold = d // r
    pred2d = jnp.reshape(pred2d, (rows, d_fold))
    targ2d = jnp.reshape(targ2d, (rows, d_fold))

    itemsize = max(jnp.dtype(pred2d.dtype).itemsize,
                   jnp.dtype(targ2d.dtype).itemsize)

    # --- tile selection -----------------------------------------------------
    # VMEM use ~= 2 inputs x 2 pipeline buffers x rows x tile_d x itemsize,
    # kept well under v5e's 16 MiB default scoped-VMEM limit.
    d_128 = ((d_fold + 127) // 128) * 128
    max_block_bytes = 2 * 1024 * 1024   # per input, per pipeline buffer
    max_lane_groups = 256               # bounds the unrolled inner loop
    td_cap = min(max_block_bytes // max(rows * itemsize, 1),
                 max_lane_groups * 128)
    td_cap = max(128, (td_cap // 128) * 128)
    tile_d = min(d_128, td_cap)

    total_tiles = pl.cdiv(d_fold, tile_d)
    # Parallel split of the feature axis across TensorCores (v7x has 2 TCs;
    # on v5e/v6e this is just a serial outer loop with negligible overhead).
    n_chunks = 2 if total_tiles >= 4 else 1
    tpc = pl.cdiv(total_tiles, n_chunks)
    mask_tail = (n_chunks * tpc * tile_d) != d_fold

    kernel = functools.partial(
        _dice_partial_kernel,
        d_valid=d_fold, tile_d=tile_d, tiles_per_chunk=tpc,
        mask_tail=mask_tail, p_pow=p)

    def in_map(c, k):
        # Clamp so padding steps of the last chunk re-read a valid block
        # (their contribution is fully masked out in the kernel).
        return (0, jnp.minimum(c * tpc + k, total_tiles - 1))

    num_part, den_part = pl.pallas_call(
        kernel,
        out_shape=(
            jax.ShapeDtypeStruct((n_chunks, rows, 128), jnp.float32),
            jax.ShapeDtypeStruct((n_chunks, rows, 128), jnp.float32),
        ),
        grid_spec=pltpu.PrefetchScalarGridSpec(
            num_scalar_prefetch=0,
            grid=(n_chunks, tpc),
            in_specs=[
                pl.BlockSpec((rows, tile_d), in_map),
                pl.BlockSpec((rows, tile_d), in_map),
            ],
            out_specs=(
                pl.BlockSpec((1, rows, 128), lambda c, k: (c, 0, 0)),
                pl.BlockSpec((1, rows, 128), lambda c, k: (c, 0, 0)),
            ),
        ),
        compiler_params=pltpu.CompilerParams(
            dimension_semantics=("parallel", "arbitrary")),
    )(pred2d, targ2d)

    # Tiny epilogue in JAX: cross-chunk + cross-lane + cross-fold combine,
    # then the dice ratio and the requested reduction.
    num = jnp.sum(num_part, axis=(0, 2)).reshape(n, r).sum(axis=1) + smooth
    den = jnp.sum(den_part, axis=(0, 2)).reshape(n, r).sum(axis=1) + smooth
    loss = 1.0 - num / den
    if reduction == "mean":
        return jnp.mean(loss)
    if reduction == "sum":
        return jnp.sum(loss)
    return loss


def _reference(predict, target, smooth=1.0, p=2):
    n = predict.shape[0]
    pr = jnp.reshape(predict, (n, -1)).astype(jnp.float32)
    tg = jnp.reshape(target, (n, -1)).astype(jnp.float32)
    num = jnp.sum(pr * tg, axis=1) + smooth
    den = jnp.sum(pr**p + tg**p, axis=1) + smooth
    return jnp.mean(1.0 - num / den)


if __name__ == "__main__":
    key = jax.random.PRNGKey(0)
    k1, k2 = jax.random.split(key)
    # NCHW inputs, e.g. sigmoid probabilities vs. binary mask.
    x_shape = (2, 4, 16, 16)
    predict = jax.nn.sigmoid(jax.random.normal(k1, x_shape, dtype=jnp.float32))
    target = (jax.random.uniform(k2, x_shape) > 0.5).astype(jnp.float32)

    loss_fn = jax.jit(
        lambda a, b: binary_dice_loss(a, b, smooth=1.0, p=2, reduction="mean"))
    loss = jax.block_until_ready(loss_fn(predict, target))

    ref = _reference(predict, target)
    assert jnp.allclose(loss, ref, rtol=1e-5, atol=1e-6), (loss, ref)
    print("KERNEL_OK")
</pallas_src>

<mosaic_0001>
module attributes {stable_mosaic.version = 11 : i64} {
  func.func @_dice_partial_kernel(%arg0: i32, %arg1: i32, %arg2: memref<8x256xf32, #tpu.memory_space<vmem>>, %arg3: memref<8x256xf32, #tpu.memory_space<vmem>>, %arg4: memref<1x8x128xf32, #tpu.memory_space<vmem>>, %arg5: memref<1x8x128xf32, #tpu.memory_space<vmem>>) attributes {dimension_semantics = [#tpu.dimension_semantics<parallel>, #tpu.dimension_semantics<arbitrary>], iteration_bounds = array<i64: 1, 1>, scalar_prefetch = 0 : i64, scratch_operands = 0 : i64, tpu.core_type = #tpu.core_type<tc>, window_params = [{transform_indices = @transform_0, window_bounds = array<i64: 8, 256>}, {transform_indices = @transform_1, window_bounds = array<i64: 8, 256>}, {transform_indices = @transform_2, window_bounds = array<i64: 1, 8, 128>}, {transform_indices = @transform_3, window_bounds = array<i64: 1, 8, 128>}]} {
    %c0_i32 = arith.constant 0 : i32
    %0 = arith.cmpi eq, %arg1, %c0_i32 : i32
    %1 = arith.extui %0 : i1 to i32
    %c0_i32_0 = arith.constant 0 : i32
    %2 = arith.cmpi ne, %1, %c0_i32_0 : i32
    scf.if %2 {
      %cst_20 = arith.constant 0.000000e+00 : f32
      %29 = vector.broadcast %cst_20 : f32 to vector<1x8x128xf32>
      %c0_21 = arith.constant 0 : index
      %c0_22 = arith.constant 0 : index
      %c0_23 = arith.constant 0 : index
      %30 = vector.load %arg4[%c0_21, %c0_22, %c0_23] : memref<1x8x128xf32, #tpu.memory_space<vmem>>, vector<1x8x128xf32>
      tpu.vector_store %arg4[%c0_21, %c0_22, %c0_23], %29 {strides = array<i32>} : memref<1x8x128xf32, #tpu.memory_space<vmem>>, vector<1x8x128xf32>,
      %cst_24 = arith.constant 0.000000e+00 : f32
      %31 = vector.broadcast %cst_24 : f32 to vector<1x8x128xf32>
      %c0_25 = arith.constant 0 : index
      %c0_26 = arith.constant 0 : index
      %c0_27 = arith.constant 0 : index
      %32 = vector.load %arg5[%c0_25, %c0_26, %c0_27] : memref<1x8x128xf32, #tpu.memory_space<vmem>>, vector<1x8x128xf32>
      tpu.vector_store %arg5[%c0_25, %c0_26, %c0_27], %31 {strides = array<i32>} : memref<1x8x128xf32, #tpu.memory_space<vmem>>, vector<1x8x128xf32>,
    } else {
    }
    %cst = arith.constant 0.000000e+00 : f32
    %3 = vector.broadcast %cst : f32 to vector<8x128xf32>
    %cst_1 = arith.constant 0.000000e+00 : f32
    %4 = vector.broadcast %cst_1 : f32 to vector<8x128xf32>
    %c0 = arith.constant 0 : index
    %c0_2 = arith.constant 0 : index
    %5 = vector.load %arg2[%c0, %c0_2] : memref<8x256xf32, #tpu.memory_space<vmem>>, vector<8x128xf32>
    %c0_3 = arith.constant 0 : index
    %c0_4 = arith.constant 0 : index
    %6 = vector.load %arg3[%c0_3, %c0_4] : memref<8x256xf32, #tpu.memory_space<vmem>>, vector<8x128xf32>
    %7 = arith.mulf %5, %6 : vector<8x128xf32>
    %8 = arith.mulf %5, %5 : vector<8x128xf32>
    %9 = arith.mulf %6, %6 : vector<8x128xf32>
    %10 = arith.addf %8, %9 : vector<8x128xf32>
    %11 = arith.addf %3, %7 : vector<8x128xf32>
    %12 = arith.addf %4, %10 : vector<8x128xf32>
    %c0_5 = arith.constant 0 : index
    %c128 = arith.constant 128 : index
    %13 = vector.load %arg2[%c0_5, %c128] : memref<8x256xf32, #tpu.memory_space<vmem>>, vector<8x128xf32>
    %c0_6 = arith.constant 0 : index
    %c128_7 = arith.constant 128 : index
    %14 = vector.load %arg3[%c0_6, %c128_7] : memref<8x256xf32, #tpu.memory_space<vmem>>, vector<8x128xf32>
    %15 = arith.mulf %13, %14 : vector<8x128xf32>
    %16 = arith.mulf %13, %13 : vector<8x128xf32>
    %17 = arith.mulf %14, %14 : vector<8x128xf32>
    %18 = arith.addf %16, %17 : vector<8x128xf32>
    %19 = arith.addf %11, %15 : vector<8x128xf32>
    %20 = arith.addf %12, %18 : vector<8x128xf32>
    %c0_8 = arith.constant 0 : index
    %c0_9 = arith.constant 0 : index
    %c0_10 = arith.constant 0 : index
    %21 = vector.load %arg4[%c0_8, %c0_9, %c0_10] : memref<1x8x128xf32, #tpu.memory_space<vmem>>, vector<1x8x128xf32>
    %22 = vector.shape_cast %19 : vector<8x128xf32> to vector<1x8x128xf32>
    %23 = arith.addf %21, %22 : vector<1x8x128xf32>
    %c0_11 = arith.constant 0 : index
    %c0_12 = arith.constant 0 : index
    %c0_13 = arith.constant 0 : index
    %24 = vector.load %arg4[%c0_11, %c0_12, %c0_13] : memref<1x8x128xf32, #tpu.memory_space<vmem>>, vector<1x8x128xf32>
    tpu.vector_store %arg4[%c0_11, %c0_12, %c0_13], %23 {strides = array<i32>} : memref<1x8x128xf32, #tpu.memory_space<vmem>>, vector<1x8x128xf32>,
    %c0_14 = arith.constant 0 : index
    %c0_15 = arith.constant 0 : index
    %c0_16 = arith.constant 0 : index
    %25 = vector.load %arg5[%c0_14, %c0_15, %c0_16] : memref<1x8x128xf32, #tpu.memory_space<vmem>>, vector<1x8x128xf32>
    %26 = vector.shape_cast %20 : vector<8x128xf32> to vector<1x8x128xf32>
    %27 = arith.addf %25, %26 : vector<1x8x128xf32>
    %c0_17 = arith.constant 0 : index
    %c0_18 = arith.constant 0 : index
    %c0_19 = arith.constant 0 : index
    %28 = vector.load %arg5[%c0_17, %c0_18, %c0_19] : memref<1x8x128xf32, #tpu.memory_space<vmem>>, vector<1x8x128xf32>
    tpu.vector_store %arg5[%c0_17, %c0_18, %c0_19], %27 {strides = array<i32>} : memref<1x8x128xf32, #tpu.memory_space<vmem>>, vector<1x8x128xf32>,
    return
  }
  func.func @transform_0(%arg0: i32, %arg1: i32) -> (i32, i32) {
    %c1_i32 = arith.constant 1 : i32
    %0 = arith.muli %arg0, %c1_i32 : i32
    %1 = arith.addi %0, %arg1 : i32
    %c0_i32 = arith.constant 0 : i32
    %2 = arith.minsi %1, %c0_i32 : i32
    %c0_i32_0 = arith.constant 0 : i32
    %c0_i32_1 = arith.constant 0 : i32
    return %c0_i32_0, %2 : i32, i32
  }
  func.func @transform_1(%arg0: i32, %arg1: i32) -> (i32, i32) {
    %c1_i32 = arith.constant 1 : i32
    %0 = arith.muli %arg0, %c1_i32 : i32
    %1 = arith.addi %0, %arg1 : i32
    %c0_i32 = arith.constant 0 : i32
    %2 = arith.minsi %1, %c0_i32 : i32
    %c0_i32_0 = arith.constant 0 : i32
    %c0_i32_1 = arith.constant 0 : i32
    return %c0_i32_0, %2 : i32, i32
  }
  func.func @transform_2(%arg0: i32, %arg1: i32) -> (i32, i32, i32) {
    %c0_i32 = arith.constant 0 : i32
    %c0_i32_0 = arith.constant 0 : i32
    %c0_i32_1 = arith.constant 0 : i32
    return %arg0, %c0_i32, %c0_i32_0 : i32, i32, i32
  }
  func.func @transform_3(%arg0: i32, %arg1: i32) -> (i32, i32, i32) {
    %c0_i32 = arith.constant 0 : i32
    %c0_i32_0 = arith.constant 0 : i32
    %c0_i32_1 = arith.constant 0 : i32
    return %arg0, %c0_i32, %c0_i32_0 : i32, i32, i32
  }
}

</mosaic_0001>

<bundles_post_ra>
// kernel: _lambda_.1
= control target key start
LH: loop header
LB: loop body
LE: loop exit
PB: predicated region body
PF: predicated region fallthrough
CT: control target
= control target key end

     0   :  { %s164_s0 = inlined_call_operand.vmem [shape: f32[8,256], index: 0, kind: input, shape index: {}]   ;;  %s165_s1 = inlined_call_operand.vmem [shape: f32[8,256], index: 1, kind: input, shape index: {}]   ;;  %s166_s2 = inlined_call_operand.vmem [shape: f32[1,8,128], index: 2, kind: output, shape index: {0}]   ;;  %s167_s3 = inlined_call_operand.vmem [shape: f32[1,8,128], index: 3, kind: output, shape index: {1}]  }
   0x1   :  { %v83_v0 = vld [vmem:[%s164_s0] sm:$0xff]  ;;  %v91_v2 = vld [vmem:[%s164_s0 + $0x8] sm:$0xff] }
   0x2   :  { %v84_v1 = vld [vmem:[%s165_s1] sm:$0xff]  ;;  %v92_v4 = vld [vmem:[%s165_s1 + $0x8] sm:$0xff]  ;;  %v86_v5 = vmul.f32 %v83_v0, %v83_v0  ;;  %v94_v7 = vmul.f32 %v91_v2, %v91_v2 }
   0x3   :  { %v85_v3 = vmul.f32 %v84_v1, %v83_v0  ;;  %v87_v6 = vmul.f32 %v84_v1, %v84_v1  ;;  %v93_v8 = vmul.f32 %v92_v4, %v91_v2  ;;  %v95_v9 = vmul.f32 %v92_v4, %v92_v4 }
   0x5   :  { %v88_v10 = vadd.f32 %v87_v6, %v86_v5  ;;  %v97_v11 = vadd.f32 %v93_v8, %v85_v3  ;;  %v96_v12 = vadd.f32 %v95_v9, %v94_v7 }
   0x7   :  { %v98_v13 = vadd.f32 %v96_v12, %v88_v10  ;;  %101 = vst [vmem:[%s166_s2] sm:$0xff] %v97_v11 }
   0x9   :  { %104 = vst [vmem:[%s167_s3] sm:$0xff] %v98_v13 }

</bundles_post_ra>
